<compile_context>
chip_gen: v7x
topology: tpu7x:2x2x1
jax: 0.10.0
libtpu: 0.0.40
codegen_flags: <defaults>
</compile_context>

<pallas_src>
import jax
import jax.numpy as jnp
from jax.experimental import pallas as pl
from jax.experimental.pallas import tpu as pltpu


# ------------------------------ constants ------------------------------------

REP = 200          # true representation width
HID = 100          # true per-head hidden width
REP_P = 256        # rep width padded to MXU / lane multiple (also output slab width)
HID_P = 128        # per-head hidden padded
HEAD_P = 2 * HID_P # fused treated+control hidden width (= 256)
TM_MAX = 1024      # max batch-tile rows per grid step


# ----------------------------- Pallas kernel ---------------------------------

def _hlearner_kernel(x_ref,
                     w1_ref, b1_ref, w2_ref, b2_ref, w3_ref, b3_ref,
                     wh1_ref, bh1_ref, wh2_ref, bh2_ref, wh3_ref, bh3_ref,
                     out_ref):
    """One batch tile: rep trunk + fused treated/control heads, all on the MXU.

    Output slab layout (per row): [ rep(200) | y_treated | y_control | 0...0 ].
    """

    def elu(v):
        # nn.ELU(alpha=1): v if v > 0 else exp(v) - 1.  exp(min(v,0)) avoids overflow.
        # ELU(0) == 0 exactly, so zero-padded lanes stay exactly zero everywhere.
        # (expm1 would be marginally more accurate; exp-1 keeps lowering simple.)
        return jnp.where(v > 0, v, jnp.exp(jnp.minimum(v, 0.0)) - 1.0)

    def lin(h, w_ref, b_ref):
        # bf16 MXU inputs, f32 accumulation, f32 bias/ELU math (v5e-safe).
        return jnp.dot(h.astype(jnp.bfloat16), w_ref[...],
                       preferred_element_type=jnp.float32) + b_ref[...]

    # --- representation trunk (widths padded to 256) ---
    h = x_ref[...]
    h = elu(lin(h, w1_ref, b1_ref))
    h = elu(lin(h, w2_ref, b2_ref))
    h = elu(lin(h, w3_ref, b3_ref))        # (TM, 256); cols [200:256] are exactly 0

    # --- fused treated + control heads (block-diagonal packing) ---
    z = elu(lin(h, wh1_ref, bh1_ref))      # (TM, 256): [treated_128 | control_128]
    z = elu(lin(z, wh2_ref, bh2_ref))      # block-diag keeps heads independent

    # Fused head layer 3 is widened to (256, 256): the only nonzero columns are
    # REP (treated scalar) and REP+1 (control scalar).  Adding it onto h lands y
    # in the rep slab's zero padding -> ONE dense (TM, 256) store, no masked vst.
    out_ref[...] = h + lin(z, wh3_ref, bh3_ref)


# ------------------------------ JAX wrapper ----------------------------------

def _round_up(v, m):
    return ((v + m - 1) // m) * m


def _choose_tm(n):
    """Biggest useful batch tile: amortize per-step overhead for large N, avoid
    padding tiny batches to 1024 rows.  (On v7x, prefer N such that the grid has
    >= 2 (even) steps so both TensorCores get work.)"""
    if n <= TM_MAX:
        return max(8, _round_up(n, 8))
    return TM_MAX


@jax.jit
def hlearner_forward_packed(x, packed):
    """x: (N, D) f32.  packed: 12 padded/fused weight (bf16) & bias (f32) arrays.

    Returns the fused (N, 256) slab: cols [0:200]=rep, [200]=y_treated,
    [201]=y_control, rest zero.  Production consumers should use this slab
    directly (no extra HBM pass); hlearner_forward below slices it for the
    PyTorch-shaped interface.
    """
    n, d = x.shape
    tm = _choose_tm(n)
    n_pad = _round_up(n, tm)
    if n_pad != n:
        x = jnp.pad(x, ((0, n_pad - n), (0, 0)))   # padded rows sliced off below
    grid = (n_pad // tm,)

    # Weights/biases: full block, constant index_map -> DMA'd once, VMEM-resident.
    weight_specs = [pl.BlockSpec(p.shape, lambda i: (0, 0)) for p in packed]
    in_specs = [pl.BlockSpec((tm, d), lambda i: (i, 0))] + weight_specs
    out_specs = pl.BlockSpec((tm, REP_P), lambda i: (i, 0))
    out_shape = jax.ShapeDtypeStruct((n_pad, REP_P), jnp.float32)

    weight_bytes = sum(int(p.size) * p.dtype.itemsize for p in packed)
    macs_per_row = (d * REP_P + 2 * REP_P * REP_P
                    + REP_P * HEAD_P + HEAD_P * HEAD_P + HEAD_P * REP_P)
    flops = 2 * n_pad * macs_per_row
    transcendentals = n_pad * (3 * REP_P + 2 * HEAD_P)
    bytes_accessed = n_pad * (d + REP_P) * 4 + weight_bytes

    out = pl.pallas_call(
        _hlearner_kernel,
        out_shape=out_shape,
        grid=grid,
        in_specs=in_specs,
        out_specs=out_specs,
        compiler_params=pltpu.CompilerParams(
            dimension_semantics=("parallel",)),   # batch axis shards across TCs on v7x
        cost_estimate=pl.CostEstimate(flops=flops,
                                      transcendentals=transcendentals,
                                      bytes_accessed=bytes_accessed),
    )(x, *packed)

    return out[:n] if n_pad != n else out


@jax.jit
def hlearner_forward(x, packed):
    """PyTorch-shaped interface: (rep [N,200], y_treated [N,1], y_control [N,1]).

    The column slices here are interface plumbing only; large-N consumers should
    take hlearner_forward_packed's slab directly to avoid the extra HBM pass.
    """
    out = hlearner_forward_packed(x, packed)
    rep = out[:, :REP]
    y1 = out[:, REP:REP + 1]
    y0 = out[:, REP + 1:REP + 2]
    return rep, y1, y0


# ----------------------- parameter init + kernel packing ---------------------

def _init_linear(key, fan_in, fan_out):
    """PyTorch nn.Linear default: U(-1/sqrt(fan_in), 1/sqrt(fan_in))."""
    kw, kb = jax.random.split(key)
    bound = 1.0 / jnp.sqrt(jnp.float32(fan_in))
    w = jax.random.uniform(kw, (fan_in, fan_out), jnp.float32, -bound, bound)
    b = jax.random.uniform(kb, (1, fan_out), jnp.float32, -bound, bound)
    return w, b


def make_params(key, input_dim):
    """Raw (unpadded, unfused) parameters matching the PyTorch module layout."""
    dims = [
        (input_dim, REP), (REP, REP), (REP, REP),   # rep trunk
        (REP, HID), (HID, HID), (HID, 1),           # head_treated
        (REP, HID), (HID, HID), (HID, 1),           # head_control
    ]
    keys = jax.random.split(key, len(dims))
    params = []
    for k, (fi, fo) in zip(keys, dims):
        w, b = _init_linear(k, fi, fo)
        params.extend([w, b])
    return tuple(params)


def pack_params(params):
    """Pad to MXU-friendly widths, fuse the two heads, cast weights to bf16.

    Done once, outside the kernel.  Biases stay f32 (bias/ELU math is f32).
    """
    (w1, b1, w2, b2, w3, b3,
     wt1, bt1, wt2, bt2, wt3, bt3,
     wc1, bc1, wc2, bc2, wc3, bc3) = params

    def padw(a, rows, cols):
        z = jnp.zeros((rows, cols), jnp.float32).at[:a.shape[0], :a.shape[1]].set(a)
        return z.astype(jnp.bfloat16)          # MXU input dtype

    def padb(a, cols):
        return jnp.zeros((1, cols), jnp.float32).at[:, :a.shape[1]].set(a)

    # rep trunk: 200 -> 256 wide
    w1p = padw(w1, w1.shape[0], REP_P); b1p = padb(b1, REP_P)
    w2p = padw(w2, REP_P, REP_P);       b2p = padb(b2, REP_P)
    w3p = padw(w3, REP_P, REP_P);       b3p = padb(b3, REP_P)

    # fused head layer 1: [treated | control], each padded 100 -> 128
    wh1 = jnp.zeros((REP_P, HEAD_P), jnp.float32)
    wh1 = wh1.at[:REP, :HID].set(wt1).at[:REP, HID_P:HID_P + HID].set(wc1)
    bh1 = jnp.zeros((1, HEAD_P), jnp.float32)
    bh1 = bh1.at[:, :HID].set(bt1).at[:, HID_P:HID_P + HID].set(bc1)

    # fused head layer 2: block-diagonal so the heads stay independent
    wh2 = jnp.zeros((HEAD_P, HEAD_P), jnp.float32)
    wh2 = wh2.at[:HID, :HID].set(wt2).at[HID_P:HID_P + HID, HID_P:HID_P + HID].set(wc2)
    bh2 = jnp.zeros((1, HEAD_P), jnp.float32)
    bh2 = bh2.at[:, :HID].set(bt2).at[:, HID_P:HID_P + HID].set(bc2)

    # fused head layer 3, widened to the output slab width: treated scalar lands
    # in column REP, control scalar in column REP+1 (all other columns zero).
    wh3 = jnp.zeros((HEAD_P, REP_P), jnp.float32)
    wh3 = wh3.at[:HID, REP:REP + 1].set(wt3)
    wh3 = wh3.at[HID_P:HID_P + HID, REP + 1:REP + 2].set(wc3)
    bh3 = jnp.zeros((1, REP_P), jnp.float32)
    bh3 = bh3.at[:, REP:REP + 1].set(bt3).at[:, REP + 1:REP + 2].set(bc3)

    return (w1p, b1p, w2p, b2p, w3p, b3p,
            wh1.astype(jnp.bfloat16), bh1,
            wh2.astype(jnp.bfloat16), bh2,
            wh3.astype(jnp.bfloat16), bh3)


# -------------------------- pure-JAX reference check --------------------------

def _reference_forward(x, params):
    """Unfused, unpadded reference using the same bf16-input / f32-accumulate
    matmul precision as the kernel (validates padding/fusion/packing)."""
    def elu(v):
        return jnp.where(v > 0, v, jnp.exp(jnp.minimum(v, 0.0)) - 1.0)

    def lin(h, w, b):
        return jnp.dot(h.astype(jnp.bfloat16), w.astype(jnp.bfloat16),
                       preferred_element_type=jnp.float32) + b

    (w1, b1, w2, b2, w3, b3,
     wt1, bt1, wt2, bt2, wt3, bt3,
     wc1, bc1, wc2, bc2, wc3, bc3) = params
    h = elu(lin(x, w1, b1))
    h = elu(lin(h, w2, b2))
    h = elu(lin(h, w3, b3))
    t = elu(lin(h, wt1, bt1))
    t = elu(lin(t, wt2, bt2))
    y1 = lin(t, wt3, bt3)
    c = elu(lin(h, wc1, bc1))
    c = elu(lin(c, wc2, bc2))
    y0 = lin(c, wc3, bc3)
    return h, y1, y0


# ----------------------------------- main ------------------------------------

if __name__ == "__main__":
    key = jax.random.PRNGKey(0)
    k_params, k_x = jax.random.split(key)

    batch = 8
    input_dim = 32

    raw_params = make_params(k_params, input_dim)
    packed = pack_params(raw_params)
    x = jax.random.normal(k_x, (batch, input_dim), jnp.float32)

    rep, y1, y0 = hlearner_forward(x, packed)
    jax.block_until_ready((rep, y1, y0))

    # correctness check against pure-JAX (unfused, unpadded) reference
    rep_ref, y1_ref, y0_ref = _reference_forward(x, raw_params)
    assert rep.shape == (batch, REP) and y1.shape == (batch, 1) and y0.shape == (batch, 1)
    assert jnp.allclose(rep, rep_ref, atol=2e-2, rtol=2e-2)
    assert jnp.allclose(y1, y1_ref, atol=2e-2, rtol=2e-2)
    assert jnp.allclose(y0, y0_ref, atol=2e-2, rtol=2e-2)

    print("KERNEL_OK")
</pallas_src>

<mosaic_0001>
module attributes {stable_mosaic.version = 11 : i64} {
  func.func @_hlearner_kernel(%arg0: i32, %arg1: memref<8x32xf32, #tpu.memory_space<vmem>>, %arg2: memref<32x256xbf16, #tpu.memory_space<vmem>>, %arg3: memref<1x256xf32, #tpu.memory_space<vmem>>, %arg4: memref<256x256xbf16, #tpu.memory_space<vmem>>, %arg5: memref<1x256xf32, #tpu.memory_space<vmem>>, %arg6: memref<256x256xbf16, #tpu.memory_space<vmem>>, %arg7: memref<1x256xf32, #tpu.memory_space<vmem>>, %arg8: memref<256x256xbf16, #tpu.memory_space<vmem>>, %arg9: memref<1x256xf32, #tpu.memory_space<vmem>>, %arg10: memref<256x256xbf16, #tpu.memory_space<vmem>>, %arg11: memref<1x256xf32, #tpu.memory_space<vmem>>, %arg12: memref<256x256xbf16, #tpu.memory_space<vmem>>, %arg13: memref<1x256xf32, #tpu.memory_space<vmem>>, %arg14: memref<8x256xf32, #tpu.memory_space<vmem>>) attributes {dimension_semantics = [#tpu.dimension_semantics<parallel>], iteration_bounds = array<i64: 1>, scalar_prefetch = 0 : i64, scratch_operands = 0 : i64, tpu.core_type = #tpu.core_type<tc>, window_params = [{transform_indices = @transform_0, window_bounds = array<i64: 8, 32>}, {pipeline_mode = #tpu.pipeline_mode<synchronous>, transform_indices = @transform_1, window_bounds = array<i64: 32, 256>}, {pipeline_mode = #tpu.pipeline_mode<synchronous>, transform_indices = @transform_2, window_bounds = array<i64: 1, 256>}, {pipeline_mode = #tpu.pipeline_mode<synchronous>, transform_indices = @transform_3, window_bounds = array<i64: 256, 256>}, {pipeline_mode = #tpu.pipeline_mode<synchronous>, transform_indices = @transform_4, window_bounds = array<i64: 1, 256>}, {pipeline_mode = #tpu.pipeline_mode<synchronous>, transform_indices = @transform_5, window_bounds = array<i64: 256, 256>}, {pipeline_mode = #tpu.pipeline_mode<synchronous>, transform_indices = @transform_6, window_bounds = array<i64: 1, 256>}, {pipeline_mode = #tpu.pipeline_mode<synchronous>, transform_indices = @transform_7, window_bounds = array<i64: 256, 256>}, {pipeline_mode = #tpu.pipeline_mode<synchronous>, transform_indices = @transform_8, window_bounds = array<i64: 1, 256>}, {pipeline_mode = #tpu.pipeline_mode<synchronous>, transform_indices = @transform_9, window_bounds = array<i64: 256, 256>}, {pipeline_mode = #tpu.pipeline_mode<synchronous>, transform_indices = @transform_10, window_bounds = array<i64: 1, 256>}, {pipeline_mode = #tpu.pipeline_mode<synchronous>, transform_indices = @transform_11, window_bounds = array<i64: 256, 256>}, {pipeline_mode = #tpu.pipeline_mode<synchronous>, transform_indices = @transform_12, window_bounds = array<i64: 1, 256>}, {transform_indices = @transform_13, window_bounds = array<i64: 8, 256>}]} {
    %c0 = arith.constant 0 : index
    %c0_0 = arith.constant 0 : index
    %0 = vector.load %arg1[%c0, %c0_0] : memref<8x32xf32, #tpu.memory_space<vmem>>, vector<8x32xf32>
    %1 = arith.truncf %0 : vector<8x32xf32> to vector<8x32xbf16>
    %c0_1 = arith.constant 0 : index
    %c0_2 = arith.constant 0 : index
    %2 = vector.load %arg2[%c0_1, %c0_2] : memref<32x256xbf16, #tpu.memory_space<vmem>>, vector<32x256xbf16>
    %cst = arith.constant dense<0.000000e+00> : vector<8x256xf32>
    %3 = tpu.matmul %1, %2, %cst {dimension_numbers = #tpu.dot_dimension_numbers<[1], [0], [0], [1], [0, 0, 1, 1], [], []>} : vector<8x32xbf16>, vector<32x256xbf16>, vector<8x256xf32> -> vector<8x256xf32>
    %c0_3 = arith.constant 0 : index
    %c0_4 = arith.constant 0 : index
    %4 = vector.load %arg3[%c0_3, %c0_4] : memref<1x256xf32, #tpu.memory_space<vmem>>, vector<1x256xf32>
    %5 = vector.broadcast %4 : vector<1x256xf32> to vector<8x256xf32>
    %6 = arith.addf %3, %5 : vector<8x256xf32>
    %cst_5 = arith.constant 0.000000e+00 : f32
    %7 = vector.broadcast %cst_5 : f32 to vector<8x256xf32>
    %8 = arith.cmpf ogt, %6, %7 : vector<8x256xf32>
    %cst_6 = arith.constant 0.000000e+00 : f32
    %9 = vector.broadcast %cst_6 : f32 to vector<8x256xf32>
    %10 = arith.minimumf %6, %9 : vector<8x256xf32>
    %11 = math.exp %10 : vector<8x256xf32>
    %cst_7 = arith.constant 1.000000e+00 : f32
    %12 = vector.broadcast %cst_7 : f32 to vector<8x256xf32>
    %13 = arith.subf %11, %12 : vector<8x256xf32>
    %14 = arith.select %8, %6, %13 : vector<8x256xi1>, vector<8x256xf32>
    %15 = arith.truncf %14 : vector<8x256xf32> to vector<8x256xbf16>
    %c0_8 = arith.constant 0 : index
    %c0_9 = arith.constant 0 : index
    %16 = vector.load %arg4[%c0_8, %c0_9] : memref<256x256xbf16, #tpu.memory_space<vmem>>, vector<256x256xbf16>
    %cst_10 = arith.constant dense<0.000000e+00> : vector<8x256xf32>
    %17 = tpu.matmul %15, %16, %cst_10 {dimension_numbers = #tpu.dot_dimension_numbers<[1], [0], [0], [1], [0, 0, 1, 1], [], []>} : vector<8x256xbf16>, vector<256x256xbf16>, vector<8x256xf32> -> vector<8x256xf32>
    %c0_11 = arith.constant 0 : index
    %c0_12 = arith.constant 0 : index
    %18 = vector.load %arg5[%c0_11, %c0_12] : memref<1x256xf32, #tpu.memory_space<vmem>>, vector<1x256xf32>
    %19 = vector.broadcast %18 : vector<1x256xf32> to vector<8x256xf32>
    %20 = arith.addf %17, %19 : vector<8x256xf32>
    %cst_13 = arith.constant 0.000000e+00 : f32
    %21 = vector.broadcast %cst_13 : f32 to vector<8x256xf32>
    %22 = arith.cmpf ogt, %20, %21 : vector<8x256xf32>
    %cst_14 = arith.constant 0.000000e+00 : f32
    %23 = vector.broadcast %cst_14 : f32 to vector<8x256xf32>
    %24 = arith.minimumf %20, %23 : vector<8x256xf32>
    %25 = math.exp %24 : vector<8x256xf32>
    %cst_15 = arith.constant 1.000000e+00 : f32
    %26 = vector.broadcast %cst_15 : f32 to vector<8x256xf32>
    %27 = arith.subf %25, %26 : vector<8x256xf32>
    %28 = arith.select %22, %20, %27 : vector<8x256xi1>, vector<8x256xf32>
    %29 = arith.truncf %28 : vector<8x256xf32> to vector<8x256xbf16>
    %c0_16 = arith.constant 0 : index
    %c0_17 = arith.constant 0 : index
    %30 = vector.load %arg6[%c0_16, %c0_17] : memref<256x256xbf16, #tpu.memory_space<vmem>>, vector<256x256xbf16>
    %cst_18 = arith.constant dense<0.000000e+00> : vector<8x256xf32>
    %31 = tpu.matmul %29, %30, %cst_18 {dimension_numbers = #tpu.dot_dimension_numbers<[1], [0], [0], [1], [0, 0, 1, 1], [], []>} : vector<8x256xbf16>, vector<256x256xbf16>, vector<8x256xf32> -> vector<8x256xf32>
    %c0_19 = arith.constant 0 : index
    %c0_20 = arith.constant 0 : index
    %32 = vector.load %arg7[%c0_19, %c0_20] : memref<1x256xf32, #tpu.memory_space<vmem>>, vector<1x256xf32>
    %33 = vector.broadcast %32 : vector<1x256xf32> to vector<8x256xf32>
    %34 = arith.addf %31, %33 : vector<8x256xf32>
    %cst_21 = arith.constant 0.000000e+00 : f32
    %35 = vector.broadcast %cst_21 : f32 to vector<8x256xf32>
    %36 = arith.cmpf ogt, %34, %35 : vector<8x256xf32>
    %cst_22 = arith.constant 0.000000e+00 : f32
    %37 = vector.broadcast %cst_22 : f32 to vector<8x256xf32>
    %38 = arith.minimumf %34, %37 : vector<8x256xf32>
    %39 = math.exp %38 : vector<8x256xf32>
    %cst_23 = arith.constant 1.000000e+00 : f32
    %40 = vector.broadcast %cst_23 : f32 to vector<8x256xf32>
    %41 = arith.subf %39, %40 : vector<8x256xf32>
    %42 = arith.select %36, %34, %41 : vector<8x256xi1>, vector<8x256xf32>
    %43 = arith.truncf %42 : vector<8x256xf32> to vector<8x256xbf16>
    %c0_24 = arith.constant 0 : index
    %c0_25 = arith.constant 0 : index
    %44 = vector.load %arg8[%c0_24, %c0_25] : memref<256x256xbf16, #tpu.memory_space<vmem>>, vector<256x256xbf16>
    %cst_26 = arith.constant dense<0.000000e+00> : vector<8x256xf32>
    %45 = tpu.matmul %43, %44, %cst_26 {dimension_numbers = #tpu.dot_dimension_numbers<[1], [0], [0], [1], [0, 0, 1, 1], [], []>} : vector<8x256xbf16>, vector<256x256xbf16>, vector<8x256xf32> -> vector<8x256xf32>
    %c0_27 = arith.constant 0 : index
    %c0_28 = arith.constant 0 : index
    %46 = vector.load %arg9[%c0_27, %c0_28] : memref<1x256xf32, #tpu.memory_space<vmem>>, vector<1x256xf32>
    %47 = vector.broadcast %46 : vector<1x256xf32> to vector<8x256xf32>
    %48 = arith.addf %45, %47 : vector<8x256xf32>
    %cst_29 = arith.constant 0.000000e+00 : f32
    %49 = vector.broadcast %cst_29 : f32 to vector<8x256xf32>
    %50 = arith.cmpf ogt, %48, %49 : vector<8x256xf32>
    %cst_30 = arith.constant 0.000000e+00 : f32
    %51 = vector.broadcast %cst_30 : f32 to vector<8x256xf32>
    %52 = arith.minimumf %48, %51 : vector<8x256xf32>
    %53 = math.exp %52 : vector<8x256xf32>
    %cst_31 = arith.constant 1.000000e+00 : f32
    %54 = vector.broadcast %cst_31 : f32 to vector<8x256xf32>
    %55 = arith.subf %53, %54 : vector<8x256xf32>
    %56 = arith.select %50, %48, %55 : vector<8x256xi1>, vector<8x256xf32>
    %57 = arith.truncf %56 : vector<8x256xf32> to vector<8x256xbf16>
    %c0_32 = arith.constant 0 : index
    %c0_33 = arith.constant 0 : index
    %58 = vector.load %arg10[%c0_32, %c0_33] : memref<256x256xbf16, #tpu.memory_space<vmem>>, vector<256x256xbf16>
    %cst_34 = arith.constant dense<0.000000e+00> : vector<8x256xf32>
    %59 = tpu.matmul %57, %58, %cst_34 {dimension_numbers = #tpu.dot_dimension_numbers<[1], [0], [0], [1], [0, 0, 1, 1], [], []>} : vector<8x256xbf16>, vector<256x256xbf16>, vector<8x256xf32> -> vector<8x256xf32>
    %c0_35 = arith.constant 0 : index
    %c0_36 = arith.constant 0 : index
    %60 = vector.load %arg11[%c0_35, %c0_36] : memref<1x256xf32, #tpu.memory_space<vmem>>, vector<1x256xf32>
    %61 = vector.broadcast %60 : vector<1x256xf32> to vector<8x256xf32>
    %62 = arith.addf %59, %61 : vector<8x256xf32>
    %cst_37 = arith.constant 0.000000e+00 : f32
    %63 = vector.broadcast %cst_37 : f32 to vector<8x256xf32>
    %64 = arith.cmpf ogt, %62, %63 : vector<8x256xf32>
    %cst_38 = arith.constant 0.000000e+00 : f32
    %65 = vector.broadcast %cst_38 : f32 to vector<8x256xf32>
    %66 = arith.minimumf %62, %65 : vector<8x256xf32>
    %67 = math.exp %66 : vector<8x256xf32>
    %cst_39 = arith.constant 1.000000e+00 : f32
    %68 = vector.broadcast %cst_39 : f32 to vector<8x256xf32>
    %69 = arith.subf %67, %68 : vector<8x256xf32>
    %70 = arith.select %64, %62, %69 : vector<8x256xi1>, vector<8x256xf32>
    %71 = arith.truncf %70 : vector<8x256xf32> to vector<8x256xbf16>
    %c0_40 = arith.constant 0 : index
    %c0_41 = arith.constant 0 : index
    %72 = vector.load %arg12[%c0_40, %c0_41] : memref<256x256xbf16, #tpu.memory_space<vmem>>, vector<256x256xbf16>
    %cst_42 = arith.constant dense<0.000000e+00> : vector<8x256xf32>
    %73 = tpu.matmul %71, %72, %cst_42 {dimension_numbers = #tpu.dot_dimension_numbers<[1], [0], [0], [1], [0, 0, 1, 1], [], []>} : vector<8x256xbf16>, vector<256x256xbf16>, vector<8x256xf32> -> vector<8x256xf32>
    %c0_43 = arith.constant 0 : index
    %c0_44 = arith.constant 0 : index
    %74 = vector.load %arg13[%c0_43, %c0_44] : memref<1x256xf32, #tpu.memory_space<vmem>>, vector<1x256xf32>
    %75 = vector.broadcast %74 : vector<1x256xf32> to vector<8x256xf32>
    %76 = arith.addf %73, %75 : vector<8x256xf32>
    %77 = arith.addf %42, %76 : vector<8x256xf32>
    %c0_45 = arith.constant 0 : index
    %c0_46 = arith.constant 0 : index
    %78 = vector.load %arg14[%c0_45, %c0_46] : memref<8x256xf32, #tpu.memory_space<vmem>>, vector<8x256xf32>
    tpu.vector_store %arg14[%c0_45, %c0_46], %77 {strides = array<i32>} : memref<8x256xf32, #tpu.memory_space<vmem>>, vector<8x256xf32>,
    return
  }
  func.func @transform_0(%arg0: i32) -> (i32, i32) {
    %c0_i32 = arith.constant 0 : i32
    %c0_i32_0 = arith.constant 0 : i32
    return %arg0, %c0_i32 : i32, i32
  }
  func.func @transform_1(%arg0: i32) -> (i32, i32) {
    %c0_i32 = arith.constant 0 : i32
    %c0_i32_0 = arith.constant 0 : i32
    %c0_i32_1 = arith.constant 0 : i32
    return %c0_i32, %c0_i32_0 : i32, i32
  }
  func.func @transform_2(%arg0: i32) -> (i32, i32) {
    %c0_i32 = arith.constant 0 : i32
    %c0_i32_0 = arith.constant 0 : i32
    %c0_i32_1 = arith.constant 0 : i32
    return %c0_i32, %c0_i32_0 : i32, i32
  }
  func.func @transform_3(%arg0: i32) -> (i32, i32) {
    %c0_i32 = arith.constant 0 : i32
    %c0_i32_0 = arith.constant 0 : i32
    %c0_i32_1 = arith.constant 0 : i32
    return %c0_i32, %c0_i32_0 : i32, i32
  }
  func.func @transform_4(%arg0: i32) -> (i32, i32) {
    %c0_i32 = arith.constant 0 : i32
    %c0_i32_0 = arith.constant 0 : i32
    %c0_i32_1 = arith.constant 0 : i32
    return %c0_i32, %c0_i32_0 : i32, i32
  }
  func.func @transform_5(%arg0: i32) -> (i32, i32) {
    %c0_i32 = arith.constant 0 : i32
    %c0_i32_0 = arith.constant 0 : i32
    %c0_i32_1 = arith.constant 0 : i32
    return %c0_i32, %c0_i32_0 : i32, i32
  }
  func.func @transform_6(%arg0: i32) -> (i32, i32) {
    %c0_i32 = arith.constant 0 : i32
    %c0_i32_0 = arith.constant 0 : i32
    %c0_i32_1 = arith.constant 0 : i32
    return %c0_i32, %c0_i32_0 : i32, i32
  }
  func.func @transform_7(%arg0: i32) -> (i32, i32) {
    %c0_i32 = arith.constant 0 : i32
    %c0_i32_0 = arith.constant 0 : i32
    %c0_i32_1 = arith.constant 0 : i32
    return %c0_i32, %c0_i32_0 : i32, i32
  }
  func.func @transform_8(%arg0: i32) -> (i32, i32) {
    %c0_i32 = arith.constant 0 : i32
    %c0_i32_0 = arith.constant 0 : i32
    %c0_i32_1 = arith.constant 0 : i32
    return %c0_i32, %c0_i32_0 : i32, i32
  }
  func.func @transform_9(%arg0: i32) -> (i32, i32) {
    %c0_i32 = arith.constant 0 : i32
    %c0_i32_0 = arith.constant 0 : i32
    %c0_i32_1 = arith.constant 0 : i32
    return %c0_i32, %c0_i32_0 : i32, i32
  }
  func.func @transform_10(%arg0: i32) -> (i32, i32) {
    %c0_i32 = arith.constant 0 : i32
    %c0_i32_0 = arith.constant 0 : i32
    %c0_i32_1 = arith.constant 0 : i32
    return %c0_i32, %c0_i32_0 : i32, i32
  }
  func.func @transform_11(%arg0: i32) -> (i32, i32) {
    %c0_i32 = arith.constant 0 : i32
    %c0_i32_0 = arith.constant 0 : i32
    %c0_i32_1 = arith.constant 0 : i32
    return %c0_i32, %c0_i32_0 : i32, i32
  }
  func.func @transform_12(%arg0: i32) -> (i32, i32) {
    %c0_i32 = arith.constant 0 : i32
    %c0_i32_0 = arith.constant 0 : i32
    %c0_i32_1 = arith.constant 0 : i32
    return %c0_i32, %c0_i32_0 : i32, i32
  }
  func.func @transform_13(%arg0: i32) -> (i32, i32) {
    %c0_i32 = arith.constant 0 : i32
    %c0_i32_0 = arith.constant 0 : i32
    return %arg0, %c0_i32 : i32, i32
  }
}

</mosaic_0001>

<bundles_post_ra>
// kernel: hlearner_forward_packed.1
= control target key start
LH: loop header
LB: loop body
LE: loop exit
PB: predicated region body
PF: predicated region fallthrough
CT: control target
= control target key end

     0   :  { %18 = vsyncpa [#allocation3], 0  ;;  %s2416_s0 = inlined_call_operand.hbm [shape: f32[8,32], index: 0, kind: input, shape index: {}]   ;;  %s2417_s1 = inlined_call_operand.hbm [shape: bf16[32,256], index: 1, kind: input, shape index: {}]   ;;  %s2418_s2 = inlined_call_operand.vmem [shape: f32[1,256], index: 2, kind: input, shape index: {}]   ;;  %s2419_s3 = inlined_call_operand.hbm [shape: bf16[256,256], index: 3, kind: input, shape index: {}]   ;;  %s2420_s4 = inlined_call_operand.vmem [shape: f32[1,256], index: 4, kind: input, shape index: {}]   ;;  %s2421_s5 = inlined_call_operand.hbm [shape: bf16[256,256], index: 5, kind: input, shape index: {}]   ;;  %s2422_s6 = inlined_call_operand.vmem [shape: f32[1,256], index: 6, kind: input, shape index: {}]   ;;  %s2423_s7 = inlined_call_operand.hbm [shape: bf16[256,256], index: 7, kind: input, shape index: {}]   ;;  %s2424_s8 = inlined_call_operand.vmem [shape: f32[1,256], index: 8, kind: input, shape index: {}]   ;;  %s2425_s9 = inlined_call_operand.hbm [shape: bf16[256,256], index: 9, kind: input, shape index: {}]   ;;  %s2426_s10 = inlined_call_operand.vmem [shape: f32[1,256], index: 10, kind: input, shape index: {}]   ;;  %s2427_s11 = inlined_call_operand.hbm [shape: bf16[256,256], index: 11, kind: input, shape index: {}]   ;;  %s2428_s12 = inlined_call_operand.vmem [shape: f32[1,256], index: 12, kind: input, shape index: {}]   ;;  %s2429_s13 = inlined_call_operand.hbm [shape: f32[8,256], index: 13, kind: output, shape index: {}]  }
   0x1   :  { %19 = vsyncpa [#allocation6], 0 }
   0x2   :  { %20 = vsyncpa [#allocation9], 0 }
   0x3   :  { %21 = vsyncpa [#allocation12], 0 }
   0x4   :  { %22 = vsyncpa [#allocation4], 0  ;;  %s2177_s25 = smov [#allocation5]   ;;  %s1991_s29 = scalar_lea.hbm %s2417_s1, 512 }
   0x5   :  { %s38_s26 = sshll.u32 %s2177_s25, 4  ;;  %p1992_p0 = scmp.ne.s32.totalorder %s2417_s1, %s1991_s29  ;;  %s39_s26 = int_to_ptr.vmem [resolvable:$true] %s38_s26 }
   0x6   :  { %p1995_p1 = scmp.lt.u32.totalorder %s1991_s29, %s2417_s1 }
   0x8   :  { %p1997_p2 = pnand %p1995_p1, %p1992_p0 }
   0xa   :  { %2000 = shalt.err (!%p1997_p2)
}
   0xb   :  { %s2001_s17 = scalar_lea.vmem %s39_s26, 512  ;;  %p2006_p4 = scmp.lt.s32.totalorder %s39_s26, %s39_s26 }
   0xc   :  { %p2002_p3 = scmp.ne.s32.totalorder %s39_s26, %s2001_s17  ;;  %p2007_p5 = scmp.lt.s32.totalorder %s2001_s17, %s2001_s17 }
   0xe   :  { %p2008_p6 = por %p2007_p5, %p2006_p4 }
  0x10   :  { %p2009_p7 = pnand %p2008_p6, %p2002_p3 }
  0x12   :  { %2012 = shalt.err (!%p2009_p7)
}
  0x13   :  { %s2178_s18 = smov 128   ;;  %s2179_s19 = smov 8  }
  0x14   :  { %44 = dma.hbm_to_vmem [thread:$0]  %s2417_s1, 512, %s39_s26, [#allocation6], %s2178_s18, %s2178_s18, %s2179_s19  }
  0x15   :  { %s2180_s22 = smov [#allocation8]   ;;  %s2181_s24 = smov [#allocation11]  }
  0x16   :  { %s66_s23 = sshll.u32 %s2180_s22, 4  ;;  %s94_s25 = sshll.u32 %s2181_s24, 4  ;;  %s67_s23 = int_to_ptr.vmem [resolvable:$true] %s66_s23  ;;  %s95_s25 = int_to_ptr.vmem [resolvable:$true] %s94_s25 }
  0x17   :  { %s2013_s29 = scalar_lea.hbm %s2421_s5, 4096 }
  0x18   :  { %p2014_p8 = scmp.ne.s32.totalorder %s2421_s5, %s2013_s29  ;;  %p2017_p9 = scmp.lt.u32.totalorder %s2013_s29, %s2421_s5 }
  0x1a   :  { %p2019_p10 = pnand %p2017_p9, %p2014_p8 }
  0x1c   :  { %2022 = shalt.err (!%p2019_p10)
}
  0x1d   :  { %s2023_s1 = scalar_lea.vmem %s67_s23, 4096  ;;  %p2028_p12 = scmp.lt.s32.totalorder %s67_s23, %s67_s23 }
  0x1e   :  { %p2024_p11 = scmp.ne.s32.totalorder %s67_s23, %s2023_s1  ;;  %p2029_p13 = scmp.lt.s32.totalorder %s2023_s1, %s2023_s1 }
  0x20   :  { %p2030_p0 = por %p2029_p13, %p2028_p12 }
  0x22   :  { %p2031_p1 = pnand %p2030_p0, %p2024_p11 }
  0x24   :  { %2034 = shalt.err (!%p2031_p1)
}
  0x25   :  { %72 = dma.hbm_to_vmem [thread:$0]  %s2421_s5, 4096, %s67_s23, [#allocation9], %s2178_s18, %s2178_s18, %s2179_s19  }
  0x26   :  { %s2035_s22 = scalar_lea.hbm %s2425_s9, 4096 }
  0x27   :  { %p2036_p2 = scmp.ne.s32.totalorder %s2425_s9, %s2035_s22  ;;  %p2039_p3 = scmp.lt.u32.totalorder %s2035_s22, %s2425_s9 }
  0x29   :  { %p2041_p4 = pnand %p2039_p3, %p2036_p2 }
  0x2b   :  { %2044 = shalt.err (!%p2041_p4)
}
  0x2c   :  { %s2045_s30 = scalar_lea.vmem %s95_s25, 4096  ;;  %p2050_p6 = scmp.lt.s32.totalorder %s95_s25, %s95_s25 }
  0x2d   :  { %p2046_p5 = scmp.ne.s32.totalorder %s95_s25, %s2045_s30  ;;  %p2051_p7 = scmp.lt.s32.totalorder %s2045_s30, %s2045_s30 }
  0x2f   :  { %p2052_p8 = por %p2051_p7, %p2050_p6 }
  0x31   :  { %p2053_p9 = pnand %p2052_p8, %p2046_p5 }
  0x33   :  { %2056 = shalt.err (!%p2053_p9)
}
  0x34   :  { %100 = dma.hbm_to_vmem [thread:$0]  %s2425_s9, 4096, %s95_s25, [#allocation12], %s2178_s18, %s2178_s18, %s2179_s19  }
  0x35   :  { %s2182_s14 = smov [#allocation2]   ;;  %s2183_s16 = smov [#allocation7]  }
  0x36   :  { %s29_s15 = sshll.u32 %s2182_s14, 4  ;;  %s52_s1 = sshll.u32 %s2183_s16, 4  ;;  %s30_s15 = int_to_ptr.vmem [resolvable:$true] %s29_s15  ;;  %s53_s1 = int_to_ptr.vmem [resolvable:$true] %s52_s1 }
  0x37   :  { %s2057_s20 = scalar_lea.hbm %s2416_s0, 128 }
  0x38   :  { %p2058_p10 = scmp.ne.s32.totalorder %s2416_s0, %s2057_s20  ;;  %p2061_p11 = scmp.lt.u32.totalorder %s2057_s20, %s2416_s0 }
  0x3a   :  { %p2063_p12 = pnand %p2061_p11, %p2058_p10 }
  0x3c   :  { %2066 = shalt.err (!%p2063_p12)
}
  0x3d   :  { %s2067_s9 = scalar_lea.vmem %s30_s15, 128  ;;  %p2072_p0 = scmp.lt.s32.totalorder %s30_s15, %s30_s15 }
  0x3e   :  { %p2068_p13 = scmp.ne.s32.totalorder %s30_s15, %s2067_s9  ;;  %p2073_p1 = scmp.lt.s32.totalorder %s2067_s9, %s2067_s9 }
  0x40   :  { %p2074_p2 = por %p2073_p1, %p2072_p0 }
  0x42   :  { %p2075_p3 = pnand %p2074_p2, %p2068_p13 }
  0x44   :  { %2078 = shalt.err (!%p2075_p3)
}
  0x45   :  { %32 = dma.hbm_to_vmem [thread:$0]  %s2416_s0, 128, %s30_s15, [#allocation3]  }
  0x46   :  { %s2079_s5 = scalar_lea.hbm %s2419_s3, 4096 }
  0x47   :  { %p2080_p4 = scmp.ne.s32.totalorder %s2419_s3, %s2079_s5  ;;  %p2083_p5 = scmp.lt.u32.totalorder %s2079_s5, %s2419_s3 }
  0x49   :  { %p2085_p6 = pnand %p2083_p5, %p2080_p4 }
  0x4b   :  { %2088 = shalt.err (!%p2085_p6)
}
  0x4c   :  { %s2089_s17 = scalar_lea.vmem %s53_s1, 4096  ;;  %p2094_p8 = scmp.lt.s32.totalorder %s53_s1, %s53_s1 }
  0x4d   :  { %p2090_p7 = scmp.ne.s32.totalorder %s53_s1, %s2089_s17  ;;  %p2095_p9 = scmp.lt.s32.totalorder %s2089_s17, %s2089_s17 }
  0x4f   :  { %p2096_p10 = por %p2095_p9, %p2094_p8 }
  0x51   :  { %p2097_p11 = pnand %p2096_p10, %p2090_p7 }
  0x53   :  { %2100 = shalt.err (!%p2097_p11)
}
  0x54   :  { %58 = dma.hbm_to_vmem [thread:$0]  %s2419_s3, 4096, %s53_s1, [#allocation6], %s2178_s18, %s2178_s18, %s2179_s19  }
  0x55   :  { %s2184_s20 = smov [#allocation10]   ;;  %s2185_s22 = smov [#allocation13]  }
  0x56   :  { %s80_s21 = sshll.u32 %s2184_s20, 4  ;;  %s108_s24 = sshll.u32 %s2185_s22, 4  ;;  %s81_s21 = int_to_ptr.vmem [resolvable:$true] %s80_s21  ;;  %s109_s24 = int_to_ptr.vmem [resolvable:$true] %s108_s24 }
  0x57   :  { %s2101_s25 = scalar_lea.hbm %s2423_s7, 4096 }
  0x58   :  { %p2102_p12 = scmp.ne.s32.totalorder %s2423_s7, %s2101_s25  ;;  %p2105_p13 = scmp.lt.u32.totalorder %s2101_s25, %s2423_s7 }
  0x5a   :  { %p2107_p0 = pnand %p2105_p13, %p2102_p12 }
  0x5c   :  { %2110 = shalt.err (!%p2107_p0)
}
  0x5d   :  { %s2111_s3 = scalar_lea.vmem %s81_s21, 4096  ;;  %p2116_p2 = scmp.lt.s32.totalorder %s81_s21, %s81_s21 }
  0x5e   :  { %p2112_p1 = scmp.ne.s32.totalorder %s81_s21, %s2111_s3  ;;  %p2117_p3 = scmp.lt.s32.totalorder %s2111_s3, %s2111_s3 }
  0x60   :  { %p2118_p4 = por %p2117_p3, %p2116_p2 }
  0x62   :  { %p2119_p5 = pnand %p2118_p4, %p2112_p1 }
  0x64   :  { %2122 = shalt.err (!%p2119_p5)
}
  0x65   :  { %86 = dma.hbm_to_vmem [thread:$0]  %s2423_s7, 4096, %s81_s21, [#allocation9], %s2178_s18, %s2178_s18, %s2179_s19  }
  0x66   :  { %s2123_s26 = scalar_lea.hbm %s2427_s11, 4096 }
  0x67   :  { %p2124_p6 = scmp.ne.s32.totalorder %s2427_s11, %s2123_s26  ;;  %p2127_p7 = scmp.lt.u32.totalorder %s2123_s26, %s2427_s11 }
  0x69   :  { %p2129_p8 = pnand %p2127_p7, %p2124_p6 }
  0x6b   :  { %2132 = shalt.err (!%p2129_p8)
}
  0x6c   :  { %s2133_s22 = scalar_lea.vmem %s109_s24, 4096  ;;  %p2138_p10 = scmp.lt.s32.totalorder %s109_s24, %s109_s24 }
  0x6d   :  { %p2134_p9 = scmp.ne.s32.totalorder %s109_s24, %s2133_s22  ;;  %p2139_p11 = scmp.lt.s32.totalorder %s2133_s22, %s2133_s22 }
  0x6f   :  { %p2140_p12 = por %p2139_p11, %p2138_p10 }
  0x71   :  { %p2141_p13 = pnand %p2140_p12, %p2134_p9 }
  0x73   :  { %2144 = shalt.err (!%p2141_p13)
}
  0x74   :  { %114 = dma.hbm_to_vmem [thread:$0]  %s2427_s11, 4096, %s109_s24, [#allocation12], %s2178_s18, %s2178_s18, %s2179_s19  }
  0x75   :  { %2167 = dma.done.wait [#allocation3], 128  }
  0x76   :  { %2168 = vsyncadd [#allocation3], 4294967168 }
  0x77   :  { %2169 = dma.done.wait [#allocation6], 4608  }
  0x78   :  { %2170 = vsyncadd [#allocation6], 4294962688 }
  0x79   :  { %2171 = dma.done.wait [#allocation9], 8192  }
  0x7a   :  { %2172 = vsyncadd [#allocation9], 4294959104 }
  0x7b   :  { %2173 = dma.done.wait [#allocation12], 8192  }
  0x7c   :  { %2174 = vsyncadd [#allocation12], 4294959104  ;;  %v2186_v0 = vmov 0   ;;  %v1725_v1 = vld [vmem:[#allocation5 + $0x4] ss:$8 sps:$4 sm:$0xff]   ;;  %v139_v5 = vld [vmem:[#allocation2] sm:$0xff]  ;;  %v147_v59 = vlaneseq }
  0x7d   :  { %213 = vmatprep.mubr.bf16.mxu0 %v2186_v0  ;;  %v1727_v2 = vld [vmem:[#allocation5] ss:$8 sps:$4 sm:$0xff]   ;;  %181 = vmatprep.subr.bf16.mxu0 %v1725_v1  ;;  %v1728_v3 = vld [vmem:[#allocation5 + $0x14] ss:$8 sps:$4 sm:$0xff]   ;;  %v1730_v4 = vld [vmem:[#allocation5 + $0x10] ss:$8 sps:$4 sm:$0xff]   ;;  %v140_v9 = vpack.c.bf16 %v139_v5, %v139_v5 }
  0x7e   :  { %182 = vmatpush1.bf16.msra.mxu0 %v1727_v2  ;;  %v1731_v6 = vld [vmem:[#allocation7 + $0x4] ss:$8 sps:$4 sm:$0xff]   ;;  %v1733_v7 = vld [vmem:[#allocation7] ss:$8 sps:$4 sm:$0xff]   ;;  %v1734_v8 = vld [vmem:[#allocation7 + $0x14] ss:$8 sps:$4 sm:$0xff]  }
  0x7f   :  { %183 = vmatprep.subr.bf16.mxu0 %v1728_v3  ;;  %440 = vmatprep.subr.bf16.mxu1 %v1731_v6  ;;  %v1736_v10 = vld [vmem:[#allocation7 + $0x10] ss:$8 sps:$4 sm:$0xff]   ;;  %vm177_vm0 = vcmask 261120   ;;  %v1737_v11 = vld [vmem:[#allocation7 + $0x24] ss:$8 sps:$4 sm:$0xff]   ;;  %v148_v60 = vshrl.u32 %v147_v59, 7 }
  0x80   :  { %441 = vmatpush1.bf16.msra.mxu1 %v1733_v7  ;;  %v1739_v12 = vld [vmem:[#allocation7 + $0x20] ss:$8 sps:$4 sm:$0xff]   ;;  %v1740_v13 = vld [vmem:[#allocation7 + $0x34] ss:$8 sps:$4 sm:$0xff]   ;;  %v1742_v14 = vld [vmem:[#allocation7 + $0x30] ss:$8 sps:$4 sm:$0xff]  }
  0x81   :  { %442 = vmatprep.subr.bf16.mxu1 %v1734_v8  ;;  %v1743_v15 = vld [vmem:[#allocation7 + $0x44] ss:$8 sps:$4 sm:$0xff]   ;;  %v1745_v16 = vld [vmem:[#allocation7 + $0x40] ss:$8 sps:$4 sm:$0xff]   ;;  %v1746_v17 = vld [vmem:[#allocation7 + $0x54] ss:$8 sps:$4 sm:$0xff]  }
  0x82   :  { %184 = vmatpush1.bf16.msra.mxu0 %v1730_v4  ;;  %v1748_v18 = vld [vmem:[#allocation7 + $0x50] ss:$8 sps:$4 sm:$0xff]   ;;  %v1749_v19 = vld [vmem:[#allocation7 + $0x64] ss:$8 sps:$4 sm:$0xff]   ;;  %v1751_v20 = vld [vmem:[#allocation7 + $0x60] ss:$8 sps:$4 sm:$0xff]  }
  0x83   :  { %v1752_v21 = vld [vmem:[#allocation7 + $0x74] ss:$8 sps:$4 sm:$0xff]   ;;  %v1754_v22 = vld [vmem:[#allocation7 + $0x70] ss:$8 sps:$4 sm:$0xff]   ;;  %v1755_v23 = vld [vmem:[#allocation7 + $0x84] ss:$8 sps:$4 sm:$0xff]  }
  0x84   :  { %443 = vmatpush1.bf16.msra.mxu1 %v1736_v10  ;;  %v1757_v24 = vld [vmem:[#allocation7 + $0x80] ss:$8 sps:$4 sm:$0xff]   ;;  %v1758_v25 = vld [vmem:[#allocation7 + $0x94] ss:$8 sps:$4 sm:$0xff]   ;;  %v1760_v26 = vld [vmem:[#allocation7 + $0x90] ss:$8 sps:$4 sm:$0xff]  }
  0x85   :  { %1543 = vmatmul.mubr.msk.bf16.vlgmr.msra.gmra.mrb[0].mxu0 %vm177_vm0, %v140_v9  ;;  %444 = vmatprep.subr.bf16.mxu1 %v1737_v11  ;;  %v1761_v27 = vld [vmem:[#allocation7 + $0xa4] ss:$8 sps:$4 sm:$0xff]   ;;  %v1763_v28 = vld [vmem:[#allocation7 + $0xa0] ss:$8 sps:$4 sm:$0xff]   ;;  %v1764_v29 = vld [vmem:[#allocation7 + $0xb4] ss:$8 sps:$4 sm:$0xff]  }
  0x86   :  { %v1766_v30 = vld [vmem:[#allocation7 + $0xb0] ss:$8 sps:$4 sm:$0xff]   ;;  %v1767_v31 = vld [vmem:[#allocation7 + $0xc4] ss:$8 sps:$4 sm:$0xff]   ;;  %v1769_v32 = vld [vmem:[#allocation7 + $0xc0] ss:$8 sps:$4 sm:$0xff]  }
  0x87   :  { %v1770_v33 = vld [vmem:[#allocation7 + $0xd4] ss:$8 sps:$4 sm:$0xff]   ;;  %v1772_v34 = vld [vmem:[#allocation7 + $0xd0] ss:$8 sps:$4 sm:$0xff]   ;;  %v1773_v35 = vld [vmem:[#allocation7 + $0xe4] ss:$8 sps:$4 sm:$0xff]  }
  0x88   :  { %445 = vmatpush1.bf16.msra.mxu1 %v1739_v12  ;;  %v1775_v36 = vld [vmem:[#allocation7 + $0xe0] ss:$8 sps:$4 sm:$0xff]   ;;  %v1776_v37 = vld [vmem:[#allocation7 + $0xf4] ss:$8 sps:$4 sm:$0xff]   ;;  %v1778_v38 = vld [vmem:[#allocation7 + $0xf0] ss:$8 sps:$4 sm:$0xff]  }
  0x89   :  { %446 = vmatprep.subr.bf16.mxu1 %v1740_v13  ;;  %v1779_v39 = vld [vmem:[#allocation8] ss:$8 sps:$4 sm:$0xff]   ;;  %v1781_v40 = vld [vmem:[#allocation8 + $0x4] ss:$8 sps:$4 sm:$0xff]   ;;  %v1784_v41 = vld [vmem:[#allocation8 + $0x14] ss:$8 sps:$4 sm:$0xff]  }
  0x8a   :  { %699 = vmatprep.subr.bf16.mxu0 %v1781_v40  ;;  %v1782_v42 = vld [vmem:[#allocation8 + $0x10] ss:$8 sps:$4 sm:$0xff]   ;;  %v1787_v43 = vld [vmem:[#allocation8 + $0x24] ss:$8 sps:$4 sm:$0xff]   ;;  %v1785_v44 = vld [vmem:[#allocation8 + $0x20] ss:$8 sps:$4 sm:$0xff]  }
  0x8b   :  { %700 = vmatpush1.bf16.msra.mxu0 %v1779_v39  ;;  %v1790_v45 = vld [vmem:[#allocation8 + $0x34] ss:$8 sps:$4 sm:$0xff]   ;;  %v1788_v46 = vld [vmem:[#allocation8 + $0x30] ss:$8 sps:$4 sm:$0xff]   ;;  %v1793_v47 = vld [vmem:[#allocation8 + $0x44] ss:$8 sps:$4 sm:$0xff]  }
  0x8c   :  { %447 = vmatpush1.bf16.msra.mxu1 %v1742_v14  ;;  %701 = vmatprep.subr.bf16.mxu0 %v1784_v41  ;;  %v1791_v48 = vld [vmem:[#allocation8 + $0x40] ss:$8 sps:$4 sm:$0xff]   ;;  %v1796_v49 = vld [vmem:[#allocation8 + $0x54] ss:$8 sps:$4 sm:$0xff]   ;;  %v1794_v50 = vld [vmem:[#allocation8 + $0x50] ss:$8 sps:$4 sm:$0xff]  }
  0x8d   :  { %448 = vmatprep.subr.bf16.mxu1 %v1743_v15  ;;  %v1799_v51 = vld [vmem:[#allocation8 + $0x64] ss:$8 sps:$4 sm:$0xff]   ;;  %v1797_v52 = vld [vmem:[#allocation8 + $0x60] ss:$8 sps:$4 sm:$0xff]   ;;  %v1802_v53 = vld [vmem:[#allocation8 + $0x74] ss:$8 sps:$4 sm:$0xff]  }
  0x8e   :  { %v1800_v54 = vld [vmem:[#allocation8 + $0x70] ss:$8 sps:$4 sm:$0xff]   ;;  %v1805_v55 = vld [vmem:[#allocation8 + $0x84] ss:$8 sps:$4 sm:$0xff]   ;;  %v1803_v56 = vld [vmem:[#allocation8 + $0x80] ss:$8 sps:$4 sm:$0xff]  }
  0x8f   :  { %702 = vmatpush1.bf16.msra.mxu0 %v1782_v42  ;;  %v1808_v57 = vld [vmem:[#allocation8 + $0x94] ss:$8 sps:$4 sm:$0xff]   ;;  %v1806_v58 = vld [vmem:[#allocation8 + $0x90] ss:$8 sps:$4 sm:$0xff]   ;;  %v2360_v61 = vsub.s32 0, %v148_v60  ;;  %v2365_v63 = vsub.s32 1, %v148_v60 }
  0x90   :  { %449 = vmatpush1.bf16.msra.mxu1 %v1745_v16  ;;  %703 = vmatprep.subr.bf16.mxu0 %v1787_v43  ;;  %v145_v62 = vld [vmem:[%s2418_s2] sm:$0x3]  ;;  %v1841_v40 = vld [vmem:[#allocation10 + $0x44] ss:$8 sps:$4 sm:$0xff]   ;;  %v1839_v41 = vld [vmem:[#allocation10 + $0x40] ss:$8 sps:$4 sm:$0xff]  }
  0x91   :  { %450 = vmatprep.subr.bf16.mxu1 %v1746_v17  ;;  %v150_v0 = vrot.slane %v145_v62, %v2360_v61  ;;  %v154_v1 = vrot.slane %v145_v62, %v2365_v63  ;;  %v1836_v39 = vld [vmem:[#allocation10 + $0x30] ss:$8 sps:$4 sm:$0xff]   ;;  %v1844_v42 = vld [vmem:[#allocation10 + $0x54] ss:$8 sps:$4 sm:$0xff]   ;;  %s2187_s28 = smov [#allocation14]  }
  0x92   :  { %v1842_v43 = vld [vmem:[#allocation10 + $0x50] ss:$8 sps:$4 sm:$0xff]   ;;  %s1527_s29 = sshll.u32 %s2187_s28, 4  ;;  %s1528_s29 = int_to_ptr.vmem [resolvable:$true] %s1527_s29 }
  0x93   :  { %704 = vmatpush1.bf16.msra.mxu0 %v1785_v44  ;;  %v1847_v44 = vld [vmem:[#allocation10 + $0x64] ss:$8 sps:$4 sm:$0xff]   ;;  %p2150_p1 = scmp.lt.s32.totalorder %s1528_s29, %s1528_s29 }
  0x94   :  { %451 = vmatpush1.bf16.msra.mxu1 %v1748_v18  ;;  %705 = vmatprep.subr.bf16.mxu0 %v1790_v45  ;;  %v1845_v45 = vld [vmem:[#allocation10 + $0x60] ss:$8 sps:$4 sm:$0xff]  }
  0x95   :  { %452 = vmatprep.subr.bf16.mxu1 %v1749_v19 }
  0x97   :  { %706 = vmatpush1.bf16.msra.mxu0 %v1788_v46  ;;  %v1850_v46 = vld [vmem:[#allocation10 + $0x74] ss:$8 sps:$4 sm:$0xff]  }
  0x98   :  { %453 = vmatpush1.bf16.msra.mxu1 %v1751_v20  ;;  %707 = vmatprep.subr.bf16.mxu0 %v1793_v47  ;;  %v1811_v20 = vld [vmem:[#allocation8 + $0xa4] ss:$8 sps:$4 sm:$0xff]   ;;  %v1848_v47 = vld [vmem:[#allocation10 + $0x70] ss:$8 sps:$4 sm:$0xff]  }
  0x99   :  { %454 = vmatprep.subr.bf16.mxu1 %v1752_v21  ;;  %v1809_v21 = vld [vmem:[#allocation8 + $0xa0] ss:$8 sps:$4 sm:$0xff]  }
  0x9b   :  { %708 = vmatpush1.bf16.msra.mxu0 %v1791_v48  ;;  %v1853_v48 = vld [vmem:[#allocation10 + $0x84] ss:$8 sps:$4 sm:$0xff]  }
  0x9c   :  { %455 = vmatpush1.bf16.msra.mxu1 %v1754_v22  ;;  %709 = vmatprep.subr.bf16.mxu0 %v1796_v49  ;;  %v1814_v22 = vld [vmem:[#allocation8 + $0xb4] ss:$8 sps:$4 sm:$0xff]   ;;  %v1851_v49 = vld [vmem:[#allocation10 + $0x80] ss:$8 sps:$4 sm:$0xff]  }
  0x9d   :  { %456 = vmatprep.subr.bf16.mxu1 %v1755_v23  ;;  %v1812_v23 = vld [vmem:[#allocation8 + $0xb0] ss:$8 sps:$4 sm:$0xff]  }
  0x9f   :  { %710 = vmatpush1.bf16.msra.mxu0 %v1794_v50  ;;  %v1856_v50 = vld [vmem:[#allocation10 + $0x94] ss:$8 sps:$4 sm:$0xff]  }
  0xa0   :  { %457 = vmatpush1.bf16.msra.mxu1 %v1757_v24  ;;  %711 = vmatprep.subr.bf16.mxu0 %v1799_v51  ;;  %v1817_v24 = vld [vmem:[#allocation8 + $0xc4] ss:$8 sps:$4 sm:$0xff]   ;;  %v1854_v51 = vld [vmem:[#allocation10 + $0x90] ss:$8 sps:$4 sm:$0xff]  }
  0xa1   :  { %458 = vmatprep.subr.bf16.mxu1 %v1758_v25  ;;  %v1815_v25 = vld [vmem:[#allocation8 + $0xc0] ss:$8 sps:$4 sm:$0xff]  }
  0xa3   :  { %712 = vmatpush1.bf16.msra.mxu0 %v1797_v52  ;;  %v268_v52 = vld [vmem:[%s2420_s4] sm:$0x3] }
  0xa4   :  { %459 = vmatpush1.bf16.msra.mxu1 %v1760_v26  ;;  %713 = vmatprep.subr.bf16.mxu0 %v1802_v53  ;;  %v1820_v26 = vld [vmem:[#allocation8 + $0xd4] ss:$8 sps:$4 sm:$0xff]   ;;  %v273_v53 = vrot.slane %v268_v52, %v2360_v61 }
  0xa5   :  { %460 = vmatprep.subr.bf16.mxu1 %v1761_v27  ;;  %v1818_v27 = vld [vmem:[#allocation8 + $0xd0] ss:$8 sps:$4 sm:$0xff]  }
  0xa7   :  { %714 = vmatpush1.bf16.msra.mxu0 %v1800_v54  ;;  %v277_v54 = vrot.slane %v268_v52, %v2365_v63 }
  0xa8   :  { %461 = vmatpush1.bf16.msra.mxu1 %v1763_v28  ;;  %715 = vmatprep.subr.bf16.mxu0 %v1805_v55  ;;  %v1823_v28 = vld [vmem:[#allocation8 + $0xe4] ss:$8 sps:$4 sm:$0xff]  }
  0xa9   :  { %462 = vmatprep.subr.bf16.mxu1 %v1764_v29  ;;  %v1821_v29 = vld [vmem:[#allocation8 + $0xe0] ss:$8 sps:$4 sm:$0xff]  }
  0xab   :  { %716 = vmatpush1.bf16.msra.mxu0 %v1803_v56 }
  0xac   :  { %463 = vmatpush1.bf16.msra.mxu1 %v1766_v30  ;;  %717 = vmatprep.subr.bf16.mxu0 %v1808_v57  ;;  %v1826_v30 = vld [vmem:[#allocation8 + $0xf4] ss:$8 sps:$4 sm:$0xff]  }
  0xad   :  { %464 = vmatprep.subr.bf16.mxu1 %v1767_v31  ;;  %v1824_v31 = vld [vmem:[#allocation8 + $0xf0] ss:$8 sps:$4 sm:$0xff]  }
  0xaf   :  { %718 = vmatpush1.bf16.msra.mxu0 %v1806_v58 }
  0xb0   :  { %465 = vmatpush1.bf16.msra.mxu1 %v1769_v32  ;;  %719 = vmatprep.subr.bf16.mxu0 %v1811_v20  ;;  %v1827_v32 = vld [vmem:[#allocation10] ss:$8 sps:$4 sm:$0xff]  }
  0xb1   :  { %466 = vmatprep.subr.bf16.mxu1 %v1770_v33  ;;  %v1829_v33 = vld [vmem:[#allocation10 + $0x4] ss:$8 sps:$4 sm:$0xff]   ;;  %v1869_v20 = vld [vmem:[#allocation10 + $0xe0] ss:$8 sps:$4 sm:$0xff]  }
  0xb3   :  { %720 = vmatpush1.bf16.msra.mxu0 %v1809_v21  ;;  %v1874_v21 = vld [vmem:[#allocation10 + $0xf4] ss:$8 sps:$4 sm:$0xff]  }
  0xb4   :  { %467 = vmatpush1.bf16.msra.mxu1 %v1772_v34  ;;  %721 = vmatprep.subr.bf16.mxu0 %v1814_v22  ;;  %v1832_v34 = vld [vmem:[#allocation10 + $0x14] ss:$8 sps:$4 sm:$0xff]   ;;  %v1872_v22 = vld [vmem:[#allocation10 + $0xf0] ss:$8 sps:$4 sm:$0xff]  }
  0xb5   :  { %468 = vmatprep.subr.bf16.mxu1 %v1773_v35  ;;  %v1830_v35 = vld [vmem:[#allocation10 + $0x10] ss:$8 sps:$4 sm:$0xff]  }
  0xb7   :  { %722 = vmatpush1.bf16.msra.mxu0 %v1812_v23  ;;  %v1875_v23 = vld [vmem:[#allocation11] ss:$8 sps:$4 sm:$0xff]  }
  0xb8   :  { %469 = vmatpush1.bf16.msra.mxu1 %v1775_v36  ;;  %723 = vmatprep.subr.bf16.mxu0 %v1817_v24  ;;  %v1835_v36 = vld [vmem:[#allocation10 + $0x24] ss:$8 sps:$4 sm:$0xff]  }
  0xb9   :  { %470 = vmatprep.subr.bf16.mxu1 %v1776_v37  ;;  %v1833_v37 = vld [vmem:[#allocation10 + $0x20] ss:$8 sps:$4 sm:$0xff]   ;;  %v1877_v24 = vld [vmem:[#allocation11 + $0x4] ss:$8 sps:$4 sm:$0xff]  }
  0xbb   :  { %724 = vmatpush1.bf16.msra.mxu0 %v1815_v25  ;;  %v1880_v25 = vld [vmem:[#allocation11 + $0x14] ss:$8 sps:$4 sm:$0xff]  }
  0xbc   :  { %471 = vmatpush1.bf16.msra.mxu1 %v1778_v38  ;;  %725 = vmatprep.subr.bf16.mxu0 %v1820_v26  ;;  %v1838_v38 = vld [vmem:[#allocation10 + $0x34] ss:$8 sps:$4 sm:$0xff]   ;;  %v1878_v26 = vld [vmem:[#allocation11 + $0x10] ss:$8 sps:$4 sm:$0xff]  }
  0xbd   :  { %958 = vmatprep.subr.bf16.mxu1 %v1829_v33  ;;  %v1892_v33 = vld [vmem:[#allocation11 + $0x54] ss:$8 sps:$4 sm:$0xff]  }
  0xbf   :  { %726 = vmatpush1.bf16.msra.mxu0 %v1818_v27  ;;  %v1883_v27 = vld [vmem:[#allocation11 + $0x24] ss:$8 sps:$4 sm:$0xff]  }
  0xc0   :  { %727 = vmatprep.subr.bf16.mxu0 %v1823_v28  ;;  %v1881_v28 = vld [vmem:[#allocation11 + $0x20] ss:$8 sps:$4 sm:$0xff]  }
  0xc3   :  { %728 = vmatpush1.bf16.msra.mxu0 %v1821_v29  ;;  %v1886_v29 = vld [vmem:[#allocation11 + $0x34] ss:$8 sps:$4 sm:$0xff]  }
  0xc4   :  { %729 = vmatprep.subr.bf16.mxu0 %v1826_v30  ;;  %v1884_v30 = vld [vmem:[#allocation11 + $0x30] ss:$8 sps:$4 sm:$0xff]  }
  0xc7   :  { %730 = vmatpush1.bf16.msra.mxu0 %v1824_v31  ;;  %v1889_v31 = vld [vmem:[#allocation11 + $0x44] ss:$8 sps:$4 sm:$0xff]  }
  0xc8   :  { %1217 = vmatprep.subr.bf16.mxu0 %v1877_v24  ;;  %v1940_v24 = vld [vmem:[#allocation13 + $0x54] ss:$8 sps:$4 sm:$0xff]  }
 0x158   :  { %v215_v2 = vpop.f32.mrb[0].mxu0 }
 0x159   :  { %v216_v3 = vadd.f32 %v215_v2, %v150_v0  ;;  %v217_v4 = vpop.f32.mrb[1].mxu0 }
 0x15a   :  { %v218_v5 = vadd.f32 %v217_v4, %v154_v1  ;;  %v219_v6 = vpop.f32.mrb[2].mxu0 }
 0x15b   :  { %v224_v7 = vmin.f32 %v216_v3, 0.0  ;;  %v220_v8 = vpop.f32.mrb[3].mxu0  ;;  %vm222_vm1 = vcmp.gt.f32.partialorder %v216_v3, 0.0 }
 0x15c   :  { %v225_v9 = vmin.f32 %v218_v5, 0.0  ;;  %vm223_vm2 = vcmp.gt.f32.partialorder %v218_v5, 0.0 }
 0x15d   :  { %v226_v10 = vmul.f32 1.442695, %v224_v7 }
 0x15e   :  { %v228_v11 = vmul.f32 1.442695, %v225_v9 }
 0x15f   :  { %1971 = vpow2.f32 %v226_v10 }
 0x160   :  { %1973 = vpow2.f32 %v228_v11  ;;  %v1859_v11 = vld [vmem:[#allocation10 + $0xa4] ss:$8 sps:$4 sm:$0xff]  }
 0x169   :  { %v1972_v12 = vpop.eup %1971 }
 0x16a   :  { %v1974_v13 = vpop.eup %1973  ;;  %v1544_v14 = vadd.f32 -1.0, %v1972_v12  ;;  %v1857_v12 = vld [vmem:[#allocation10 + $0xa0] ss:$8 sps:$4 sm:$0xff]  }
 0x16b   :  { %v1545_v15 = vadd.f32 -1.0, %v1974_v13  ;;  %v1862_v13 = vld [vmem:[#allocation10 + $0xb4] ss:$8 sps:$4 sm:$0xff]  }
 0x16c   :  { %v232_v16 = vsel %vm222_vm1, %v216_v3, %v1544_v14  ;;  %v1860_v14 = vld [vmem:[#allocation10 + $0xb0] ss:$8 sps:$4 sm:$0xff]  }
 0x16d   :  { %v233_v17 = vsel %vm223_vm2, %v218_v5, %v1545_v15  ;;  %v234_v19 = vpack.c.bf16 %v232_v16, %v232_v16  ;;  %v1865_v15 = vld [vmem:[#allocation10 + $0xc4] ss:$8 sps:$4 sm:$0xff]   ;;  %v1863_v16 = vld [vmem:[#allocation10 + $0xc0] ss:$8 sps:$4 sm:$0xff]  }
 0x16e   :  { %v235_v18 = vpack.c.bf16 %v233_v17, %v233_v17  ;;  %v1868_v17 = vld [vmem:[#allocation10 + $0xd4] ss:$8 sps:$4 sm:$0xff]  }
 0x170   :  { %472 = vmatprep.mubr.bf16.mxu1 %v235_v18  ;;  %v1866_v18 = vld [vmem:[#allocation10 + $0xd0] ss:$8 sps:$4 sm:$0xff]  }
 0x171   :  { %473 = vmatmul.mubr.bf16.vlgmr.msra.gmra.mrb[0].mxu1 %v234_v19  ;;  %v1871_v19 = vld [vmem:[#allocation10 + $0xe4] ss:$8 sps:$4 sm:$0xff]  }
 0x172   :  { %959 = vmatpush1.bf16.msra.mxu1 %v1827_v32  ;;  %v1887_v32 = vld [vmem:[#allocation11 + $0x40] ss:$8 sps:$4 sm:$0xff]  }
 0x173   :  { %960 = vmatprep.subr.bf16.mxu1 %v1832_v34  ;;  %v1890_v34 = vld [vmem:[#allocation11 + $0x50] ss:$8 sps:$4 sm:$0xff]  }
 0x176   :  { %961 = vmatpush1.bf16.msra.mxu1 %v1830_v35  ;;  %v1895_v35 = vld [vmem:[#allocation11 + $0x64] ss:$8 sps:$4 sm:$0xff]  }
 0x177   :  { %962 = vmatprep.subr.bf16.mxu1 %v1835_v36  ;;  %v1893_v36 = vld [vmem:[#allocation11 + $0x60] ss:$8 sps:$4 sm:$0xff]  }
 0x17a   :  { %963 = vmatpush1.bf16.msra.mxu1 %v1833_v37  ;;  %v1898_v37 = vld [vmem:[#allocation11 + $0x74] ss:$8 sps:$4 sm:$0xff]  }
 0x17b   :  { %964 = vmatprep.subr.bf16.mxu1 %v1838_v38  ;;  %v1896_v38 = vld [vmem:[#allocation11 + $0x70] ss:$8 sps:$4 sm:$0xff]  }
 0x17e   :  { %965 = vmatpush1.bf16.msra.mxu1 %v1836_v39  ;;  %v1901_v39 = vld [vmem:[#allocation11 + $0x84] ss:$8 sps:$4 sm:$0xff]  }
 0x17f   :  { %966 = vmatprep.subr.bf16.mxu1 %v1841_v40  ;;  %v1899_v40 = vld [vmem:[#allocation11 + $0x80] ss:$8 sps:$4 sm:$0xff]  }
 0x182   :  { %967 = vmatpush1.bf16.msra.mxu1 %v1839_v41  ;;  %v1904_v41 = vld [vmem:[#allocation11 + $0x94] ss:$8 sps:$4 sm:$0xff]  }
 0x183   :  { %968 = vmatprep.subr.bf16.mxu1 %v1844_v42  ;;  %v1902_v42 = vld [vmem:[#allocation11 + $0x90] ss:$8 sps:$4 sm:$0xff]  }
 0x186   :  { %969 = vmatpush1.bf16.msra.mxu1 %v1842_v43  ;;  %v527_v43 = vld [vmem:[%s2422_s6] sm:$0x3] }
 0x187   :  { %970 = vmatprep.subr.bf16.mxu1 %v1847_v44  ;;  %v532_v44 = vrot.slane %v527_v43, %v2360_v61 }
 0x18a   :  { %971 = vmatpush1.bf16.msra.mxu1 %v1845_v45  ;;  %v536_v45 = vrot.slane %v527_v43, %v2365_v63 }
 0x18b   :  { %972 = vmatprep.subr.bf16.mxu1 %v1850_v46 }
 0x18e   :  { %973 = vmatpush1.bf16.msra.mxu1 %v1848_v47 }
 0x18f   :  { %974 = vmatprep.subr.bf16.mxu1 %v1853_v48 }
 0x192   :  { %975 = vmatpush1.bf16.msra.mxu1 %v1851_v49 }
 0x193   :  { %976 = vmatprep.subr.bf16.mxu1 %v1856_v50 }
 0x196   :  { %977 = vmatpush1.bf16.msra.mxu1 %v1854_v51 }
 0x197   :  { %978 = vmatprep.subr.bf16.mxu1 %v1859_v11  ;;  %v1917_v11 = vld [vmem:[#allocation11 + $0xe0] ss:$8 sps:$4 sm:$0xff]  }
 0x19a   :  { %979 = vmatpush1.bf16.msra.mxu1 %v1857_v12  ;;  %v1922_v12 = vld [vmem:[#allocation11 + $0xf4] ss:$8 sps:$4 sm:$0xff]  }
 0x19b   :  { %980 = vmatprep.subr.bf16.mxu1 %v1862_v13  ;;  %v1920_v13 = vld [vmem:[#allocation11 + $0xf0] ss:$8 sps:$4 sm:$0xff]  }
 0x19e   :  { %981 = vmatpush1.bf16.msra.mxu1 %v1860_v14  ;;  %v1923_v14 = vld [vmem:[#allocation13] ss:$8 sps:$4 sm:$0xff]  }
 0x19f   :  { %982 = vmatprep.subr.bf16.mxu1 %v1865_v15  ;;  %v1925_v15 = vld [vmem:[#allocation13 + $0x4] ss:$8 sps:$4 sm:$0xff]  }
 0x1a2   :  { %983 = vmatpush1.bf16.msra.mxu1 %v1863_v16  ;;  %v1928_v16 = vld [vmem:[#allocation13 + $0x14] ss:$8 sps:$4 sm:$0xff]  }
 0x1a3   :  { %984 = vmatprep.subr.bf16.mxu1 %v1868_v17  ;;  %v1926_v17 = vld [vmem:[#allocation13 + $0x10] ss:$8 sps:$4 sm:$0xff]  }
 0x1a6   :  { %985 = vmatpush1.bf16.msra.mxu1 %v1866_v18  ;;  %v1931_v18 = vld [vmem:[#allocation13 + $0x24] ss:$8 sps:$4 sm:$0xff]  }
 0x1a7   :  { %986 = vmatprep.subr.bf16.mxu1 %v1871_v19  ;;  %v1929_v19 = vld [vmem:[#allocation13 + $0x20] ss:$8 sps:$4 sm:$0xff]  }
 0x1aa   :  { %987 = vmatpush1.bf16.msra.mxu1 %v1869_v20  ;;  %v1934_v20 = vld [vmem:[#allocation13 + $0x34] ss:$8 sps:$4 sm:$0xff]  }
 0x1ab   :  { %988 = vmatprep.subr.bf16.mxu1 %v1874_v21  ;;  %v1932_v21 = vld [vmem:[#allocation13 + $0x30] ss:$8 sps:$4 sm:$0xff]  }
 0x1ae   :  { %989 = vmatpush1.bf16.msra.mxu1 %v1872_v22  ;;  %v1937_v22 = vld [vmem:[#allocation13 + $0x44] ss:$8 sps:$4 sm:$0xff]  }
 0x1af   :  { %1476 = vmatprep.subr.bf16.mxu1 %v1925_v15 }
 0x244   :  { %v474_v55 = vpop.f32.mrb[0].mxu1 }
 0x245   :  { %v475_v56 = vadd.f32 %v474_v55, %v273_v53  ;;  %v476_v57 = vpop.f32.mrb[1].mxu1 }
 0x246   :  { %v477_v58 = vadd.f32 %v476_v57, %v277_v54  ;;  %v478_v59 = vpop.f32.mrb[2].mxu1 }
 0x247   :  { %v483_v60 = vmin.f32 %v475_v56, 0.0  ;;  %v479_v62 = vpop.f32.mrb[3].mxu1  ;;  %vm481_vm3 = vcmp.gt.f32.partialorder %v475_v56, 0.0 }
 0x248   :  { %v484_v0 = vmin.f32 %v477_v58, 0.0  ;;  %vm482_vm4 = vcmp.gt.f32.partialorder %v477_v58, 0.0 }
 0x249   :  { %v485_v1 = vmul.f32 1.442695, %v483_v60 }
 0x24a   :  { %v487_v2 = vmul.f32 1.442695, %v484_v0 }
 0x24b   :  { %1975 = vpow2.f32 %v485_v1 }
 0x24c   :  { %1977 = vpow2.f32 %v487_v2  ;;  %v1907_v2 = vld [vmem:[#allocation11 + $0xa4] ss:$8 sps:$4 sm:$0xff]  }
 0x255   :  { %v1976_v3 = vpop.eup %1975 }
 0x256   :  { %v1978_v4 = vpop.eup %1977  ;;  %v1578_v5 = vadd.f32 -1.0, %v1976_v3  ;;  %v1905_v3 = vld [vmem:[#allocation11 + $0xa0] ss:$8 sps:$4 sm:$0xff]  }
 0x257   :  { %v1579_v6 = vadd.f32 -1.0, %v1978_v4  ;;  %v1910_v4 = vld [vmem:[#allocation11 + $0xb4] ss:$8 sps:$4 sm:$0xff]  }
 0x258   :  { %v491_v7 = vsel %vm481_vm3, %v475_v56, %v1578_v5  ;;  %v1908_v5 = vld [vmem:[#allocation11 + $0xb0] ss:$8 sps:$4 sm:$0xff]  }
 0x259   :  { %v492_v8 = vsel %vm482_vm4, %v477_v58, %v1579_v6  ;;  %v493_v10 = vpack.c.bf16 %v491_v7, %v491_v7  ;;  %v1913_v6 = vld [vmem:[#allocation11 + $0xc4] ss:$8 sps:$4 sm:$0xff]   ;;  %v1911_v7 = vld [vmem:[#allocation11 + $0xc0] ss:$8 sps:$4 sm:$0xff]  }
 0x25a   :  { %v494_v9 = vpack.c.bf16 %v492_v8, %v492_v8  ;;  %v1916_v8 = vld [vmem:[#allocation11 + $0xd4] ss:$8 sps:$4 sm:$0xff]  }
 0x25c   :  { %731 = vmatprep.mubr.bf16.mxu0 %v494_v9  ;;  %v1914_v9 = vld [vmem:[#allocation11 + $0xd0] ss:$8 sps:$4 sm:$0xff]  }
 0x25d   :  { %732 = vmatmul.mubr.bf16.vlgmr.msra.gmra.mrb[4].mxu0 %v493_v10  ;;  %v1919_v10 = vld [vmem:[#allocation11 + $0xe4] ss:$8 sps:$4 sm:$0xff]  }
 0x25e   :  { %1218 = vmatpush1.bf16.msra.mxu0 %v1875_v23  ;;  %v1935_v23 = vld [vmem:[#allocation13 + $0x40] ss:$8 sps:$4 sm:$0xff]  }
 0x25f   :  { %1219 = vmatprep.subr.bf16.mxu0 %v1880_v25  ;;  %v1938_v25 = vld [vmem:[#allocation13 + $0x50] ss:$8 sps:$4 sm:$0xff]  }
 0x262   :  { %1220 = vmatpush1.bf16.msra.mxu0 %v1878_v26  ;;  %v1943_v26 = vld [vmem:[#allocation13 + $0x64] ss:$8 sps:$4 sm:$0xff]  }
 0x263   :  { %1221 = vmatprep.subr.bf16.mxu0 %v1883_v27  ;;  %v1941_v27 = vld [vmem:[#allocation13 + $0x60] ss:$8 sps:$4 sm:$0xff]  }
 0x266   :  { %1222 = vmatpush1.bf16.msra.mxu0 %v1881_v28  ;;  %v1946_v28 = vld [vmem:[#allocation13 + $0x74] ss:$8 sps:$4 sm:$0xff]  }
 0x267   :  { %1223 = vmatprep.subr.bf16.mxu0 %v1886_v29  ;;  %v1944_v29 = vld [vmem:[#allocation13 + $0x70] ss:$8 sps:$4 sm:$0xff]  }
 0x26a   :  { %1224 = vmatpush1.bf16.msra.mxu0 %v1884_v30  ;;  %v1949_v30 = vld [vmem:[#allocation13 + $0x84] ss:$8 sps:$4 sm:$0xff]  }
 0x26b   :  { %1225 = vmatprep.subr.bf16.mxu0 %v1889_v31  ;;  %v1947_v31 = vld [vmem:[#allocation13 + $0x80] ss:$8 sps:$4 sm:$0xff]  }
 0x26e   :  { %1226 = vmatpush1.bf16.msra.mxu0 %v1887_v32  ;;  %v1952_v32 = vld [vmem:[#allocation13 + $0x94] ss:$8 sps:$4 sm:$0xff]  }
 0x26f   :  { %1227 = vmatprep.subr.bf16.mxu0 %v1892_v33  ;;  %v1950_v33 = vld [vmem:[#allocation13 + $0x90] ss:$8 sps:$4 sm:$0xff]  }
 0x272   :  { %1228 = vmatpush1.bf16.msra.mxu0 %v1890_v34  ;;  %v786_v34 = vld [vmem:[%s2424_s8] sm:$0x3] }
 0x273   :  { %1229 = vmatprep.subr.bf16.mxu0 %v1895_v35  ;;  %v791_v35 = vrot.slane %v786_v34, %v2360_v61 }
 0x276   :  { %1230 = vmatpush1.bf16.msra.mxu0 %v1893_v36  ;;  %v795_v36 = vrot.slane %v786_v34, %v2365_v63 }
 0x277   :  { %1231 = vmatprep.subr.bf16.mxu0 %v1898_v37 }
 0x27a   :  { %1232 = vmatpush1.bf16.msra.mxu0 %v1896_v38 }
 0x27b   :  { %1233 = vmatprep.subr.bf16.mxu0 %v1901_v39 }
 0x27e   :  { %1234 = vmatpush1.bf16.msra.mxu0 %v1899_v40 }
 0x27f   :  { %1235 = vmatprep.subr.bf16.mxu0 %v1904_v41 }
 0x282   :  { %1236 = vmatpush1.bf16.msra.mxu0 %v1902_v42 }
 0x283   :  { %1237 = vmatprep.subr.bf16.mxu0 %v1907_v2  ;;  %v1962_v2 = vld [vmem:[#allocation13 + $0xd0] ss:$8 sps:$4 sm:$0xff]  }
 0x286   :  { %1238 = vmatpush1.bf16.msra.mxu0 %v1905_v3  ;;  %v1967_v3 = vld [vmem:[#allocation13 + $0xe4] ss:$8 sps:$4 sm:$0xff]  }
 0x287   :  { %1239 = vmatprep.subr.bf16.mxu0 %v1910_v4  ;;  %v1965_v4 = vld [vmem:[#allocation13 + $0xe0] ss:$8 sps:$4 sm:$0xff]  }
 0x28a   :  { %1240 = vmatpush1.bf16.msra.mxu0 %v1908_v5  ;;  %v1970_v5 = vld [vmem:[#allocation13 + $0xf4] ss:$8 sps:$4 sm:$0xff]  }
 0x28b   :  { %1241 = vmatprep.subr.bf16.mxu0 %v1913_v6  ;;  %v1968_v6 = vld [vmem:[#allocation13 + $0xf0] ss:$8 sps:$4 sm:$0xff]  }
 0x28e   :  { %1242 = vmatpush1.bf16.msra.mxu0 %v1911_v7  ;;  %v1045_v7 = vld [vmem:[%s2426_s10] sm:$0x3] }
 0x28f   :  { %1243 = vmatprep.subr.bf16.mxu0 %v1916_v8  ;;  %v1050_v8 = vrot.slane %v1045_v7, %v2360_v61 }
 0x292   :  { %1244 = vmatpush1.bf16.msra.mxu0 %v1914_v9  ;;  %v1054_v9 = vrot.slane %v1045_v7, %v2365_v63 }
 0x293   :  { %1245 = vmatprep.subr.bf16.mxu0 %v1919_v10 }
 0x296   :  { %1246 = vmatpush1.bf16.msra.mxu0 %v1917_v11 }
 0x297   :  { %1247 = vmatprep.subr.bf16.mxu0 %v1922_v12 }
 0x29a   :  { %1248 = vmatpush1.bf16.msra.mxu0 %v1920_v13 }
 0x330   :  { %v733_v46 = vpop.f32.mrb[4].mxu0 }
 0x331   :  { %v734_v47 = vadd.f32 %v733_v46, %v532_v44  ;;  %v735_v48 = vpop.f32.mrb[5].mxu0 }
 0x332   :  { %v736_v49 = vadd.f32 %v735_v48, %v536_v45  ;;  %v737_v50 = vpop.f32.mrb[6].mxu0 }
 0x333   :  { %v742_v51 = vmin.f32 %v734_v47, 0.0  ;;  %v738_v52 = vpop.f32.mrb[7].mxu0  ;;  %vm740_vm5 = vcmp.gt.f32.partialorder %v734_v47, 0.0 }
 0x334   :  { %v743_v53 = vmin.f32 %v736_v49, 0.0  ;;  %vm741_vm6 = vcmp.gt.f32.partialorder %v736_v49, 0.0 }
 0x335   :  { %v744_v54 = vmul.f32 1.442695, %v742_v51 }
 0x336   :  { %v746_v55 = vmul.f32 1.442695, %v743_v53 }
 0x337   :  { %1979 = vpow2.f32 %v744_v54 }
 0x338   :  { %1981 = vpow2.f32 %v746_v55  ;;  %v1955_v55 = vld [vmem:[#allocation13 + $0xa4] ss:$8 sps:$4 sm:$0xff]  }
 0x341   :  { %v1980_v56 = vpop.eup %1979 }
 0x342   :  { %v1982_v57 = vpop.eup %1981  ;;  %v1612_v58 = vadd.f32 -1.0, %v1980_v56  ;;  %v1953_v56 = vld [vmem:[#allocation13 + $0xa0] ss:$8 sps:$4 sm:$0xff]  }
 0x343   :  { %v1613_v59 = vadd.f32 -1.0, %v1982_v57  ;;  %v1958_v57 = vld [vmem:[#allocation13 + $0xb4] ss:$8 sps:$4 sm:$0xff]  }
 0x344   :  { %v2379_v60 = vsel %vm740_vm5, %v734_v47, %v1612_v58  ;;  %v1956_v58 = vld [vmem:[#allocation13 + $0xb0] ss:$8 sps:$4 sm:$0xff]  }
 0x345   :  { %v2381_v62 = vsel %vm741_vm6, %v736_v49, %v1613_v59  ;;  %v752_v1 = vpack.c.bf16 %v2379_v60, %v2379_v60  ;;  %v1961_v59 = vld [vmem:[#allocation13 + $0xc4] ss:$8 sps:$4 sm:$0xff]  }
 0x346   :  { %v753_v0 = vpack.c.bf16 %v2381_v62, %v2381_v62 }
 0x348   :  { %990 = vmatprep.mubr.bf16.mxu1 %v753_v0  ;;  %v1959_v0 = vld [vmem:[#allocation13 + $0xc0] ss:$8 sps:$4 sm:$0xff]  }
 0x349   :  { %991 = vmatmul.mubr.bf16.vlgmr.msra.gmra.mrb[4].mxu1 %v752_v1  ;;  %v1964_v1 = vld [vmem:[#allocation13 + $0xd4] ss:$8 sps:$4 sm:$0xff]  }
 0x34a   :  { %1477 = vmatpush1.bf16.msra.mxu1 %v1923_v14 }
 0x34b   :  { %1478 = vmatprep.subr.bf16.mxu1 %v1928_v16 }
 0x34e   :  { %1479 = vmatpush1.bf16.msra.mxu1 %v1926_v17 }
 0x34f   :  { %1480 = vmatprep.subr.bf16.mxu1 %v1931_v18 }
 0x352   :  { %1481 = vmatpush1.bf16.msra.mxu1 %v1929_v19 }
 0x353   :  { %1482 = vmatprep.subr.bf16.mxu1 %v1934_v20 }
 0x356   :  { %1483 = vmatpush1.bf16.msra.mxu1 %v1932_v21 }
 0x357   :  { %1484 = vmatprep.subr.bf16.mxu1 %v1937_v22 }
 0x35a   :  { %1485 = vmatpush1.bf16.msra.mxu1 %v1935_v23 }
 0x35b   :  { %1486 = vmatprep.subr.bf16.mxu1 %v1940_v24 }
 0x35e   :  { %1487 = vmatpush1.bf16.msra.mxu1 %v1938_v25 }
 0x35f   :  { %1488 = vmatprep.subr.bf16.mxu1 %v1943_v26 }
 0x362   :  { %1489 = vmatpush1.bf16.msra.mxu1 %v1941_v27 }
 0x363   :  { %1490 = vmatprep.subr.bf16.mxu1 %v1946_v28  ;;  %v1304_v28 = vld [vmem:[%s2428_s12] sm:$0x3]  ;;  %s2145_s12 = scalar_lea.vmem %s1528_s29, 256 }
 0x364   :  { %p2146_p0 = scmp.ne.s32.totalorder %s1528_s29, %s2145_s12  ;;  %p2151_p2 = scmp.lt.s32.totalorder %s2145_s12, %s2145_s12 }
 0x366   :  { %1491 = vmatpush1.bf16.msra.mxu1 %v1944_v29  ;;  %v1309_v29 = vrot.slane %v1304_v28, %v2360_v61  ;;  %p2152_p3 = por %p2151_p2, %p2150_p1 }
 0x367   :  { %1492 = vmatprep.subr.bf16.mxu1 %v1949_v30  ;;  %v1313_v30 = vrot.slane %v1304_v28, %v2365_v63 }
 0x368   :  { %p2153_p4 = pnand %p2152_p3, %p2146_p0 }
 0x36a   :  { %1493 = vmatpush1.bf16.msra.mxu1 %v1947_v31 }
 0x36b   :  { %1494 = vmatprep.subr.bf16.mxu1 %v1952_v32 }
 0x36e   :  { %1495 = vmatpush1.bf16.msra.mxu1 %v1950_v33 }
 0x36f   :  { %1496 = vmatprep.subr.bf16.mxu1 %v1955_v55 }
 0x372   :  { %1497 = vmatpush1.bf16.msra.mxu1 %v1953_v56 }
 0x373   :  { %1498 = vmatprep.subr.bf16.mxu1 %v1958_v57 }
 0x376   :  { %1499 = vmatpush1.bf16.msra.mxu1 %v1956_v58 }
 0x377   :  { %1500 = vmatprep.subr.bf16.mxu1 %v1961_v59 }
 0x37a   :  { %1501 = vmatpush1.bf16.msra.mxu1 %v1959_v0 }
 0x37b   :  { %1502 = vmatprep.subr.bf16.mxu1 %v1964_v1 }
 0x37e   :  { %1503 = vmatpush1.bf16.msra.mxu1 %v1962_v2 }
 0x37f   :  { %1504 = vmatprep.subr.bf16.mxu1 %v1967_v3 }
 0x382   :  { %1505 = vmatpush1.bf16.msra.mxu1 %v1965_v4 }
 0x383   :  { %1506 = vmatprep.subr.bf16.mxu1 %v1970_v5 }
 0x386   :  { %1507 = vmatpush1.bf16.msra.mxu1 %v1968_v6 }
 0x41c   :  { %v992_v37 = vpop.f32.mrb[4].mxu1 }
 0x41d   :  { %v993_v38 = vadd.f32 %v992_v37, %v791_v35  ;;  %v994_v39 = vpop.f32.mrb[5].mxu1 }
 0x41e   :  { %v995_v40 = vadd.f32 %v994_v39, %v795_v36  ;;  %v996_v41 = vpop.f32.mrb[6].mxu1 }
 0x41f   :  { %v1001_v42 = vmin.f32 %v993_v38, 0.0  ;;  %v997_v43 = vpop.f32.mrb[7].mxu1  ;;  %vm999_vm7 = vcmp.gt.f32.partialorder %v993_v38, 0.0 }
 0x420   :  { %v1002_v44 = vmin.f32 %v995_v40, 0.0  ;;  %vm1000_vm8 = vcmp.gt.f32.partialorder %v995_v40, 0.0 }
 0x421   :  { %v1003_v45 = vmul.f32 1.442695, %v1001_v42 }
 0x422   :  { %v1005_v46 = vmul.f32 1.442695, %v1002_v44 }
 0x423   :  { %1983 = vpow2.f32 %v1003_v45 }
 0x424   :  { %1985 = vpow2.f32 %v1005_v46 }
 0x42d   :  { %v1984_v47 = vpop.eup %1983 }
 0x42e   :  { %v1986_v48 = vpop.eup %1985  ;;  %v1646_v49 = vadd.f32 -1.0, %v1984_v47 }
 0x42f   :  { %v1647_v50 = vadd.f32 -1.0, %v1986_v48 }
 0x430   :  { %v1009_v51 = vsel %vm999_vm7, %v993_v38, %v1646_v49 }
 0x431   :  { %v1010_v52 = vsel %vm1000_vm8, %v995_v40, %v1647_v50  ;;  %v1011_v54 = vpack.c.bf16 %v1009_v51, %v1009_v51 }
 0x432   :  { %v1012_v53 = vpack.c.bf16 %v1010_v52, %v1010_v52 }
 0x434   :  { %1249 = vmatprep.mubr.bf16.mxu0 %v1012_v53 }
 0x435   :  { %1250 = vmatmul.mubr.bf16.vlgmr.msra.gmra.mrb[8].mxu0 %v1011_v54 }
 0x508   :  { %v1251_v10 = vpop.f32.mrb[8].mxu0 }
 0x509   :  { %v1252_v11 = vadd.f32 %v1251_v10, %v1050_v8  ;;  %v1253_v12 = vpop.f32.mrb[9].mxu0 }
 0x50a   :  { %v1254_v13 = vadd.f32 %v1253_v12, %v1054_v9  ;;  %v1255_v14 = vpop.f32.mrb[10].mxu0 }
 0x50b   :  { %v1260_v15 = vmin.f32 %v1252_v11, 0.0  ;;  %v1256_v16 = vpop.f32.mrb[11].mxu0  ;;  %vm1258_vm9 = vcmp.gt.f32.partialorder %v1252_v11, 0.0 }
 0x50c   :  { %v1261_v17 = vmin.f32 %v1254_v13, 0.0  ;;  %vm1259_vm10 = vcmp.gt.f32.partialorder %v1254_v13, 0.0 }
 0x50d   :  { %v1262_v18 = vmul.f32 1.442695, %v1260_v15 }
 0x50e   :  { %v1264_v19 = vmul.f32 1.442695, %v1261_v17 }
 0x50f   :  { %1987 = vpow2.f32 %v1262_v18 }
 0x510   :  { %1989 = vpow2.f32 %v1264_v19 }
 0x519   :  { %v1988_v20 = vpop.eup %1987 }
 0x51a   :  { %v1990_v21 = vpop.eup %1989  ;;  %v1680_v22 = vadd.f32 -1.0, %v1988_v20 }
 0x51b   :  { %v1681_v23 = vadd.f32 -1.0, %v1990_v21 }
 0x51c   :  { %v1268_v24 = vsel %vm1258_vm9, %v1252_v11, %v1680_v22 }
 0x51d   :  { %v1269_v25 = vsel %vm1259_vm10, %v1254_v13, %v1681_v23  ;;  %v1270_v27 = vpack.c.bf16 %v1268_v24, %v1268_v24 }
 0x51e   :  { %v1271_v26 = vpack.c.bf16 %v1269_v25, %v1269_v25 }
 0x520   :  { %1508 = vmatprep.mubr.bf16.mxu1 %v1271_v26 }
 0x521   :  { %1509 = vmatmul.mubr.bf16.vlgmr.msra.gmra.mrb[8].mxu1 %v1270_v27 }
 0x5f4   :  { %v1510_v31 = vpop.f32.mrb[8].mxu1 }
 0x5f5   :  { %v1511_v32 = vadd.f32 %v1510_v31, %v1309_v29  ;;  %v1512_v33 = vpop.f32.mrb[9].mxu1 }
 0x5f6   :  { %v1513_v34 = vadd.f32 %v1512_v33, %v1313_v30  ;;  %v1514_v35 = vpop.f32.mrb[10].mxu1 }
 0x5f7   :  { %v1517_v36 = vadd.f32 %v1511_v32, %v2379_v60  ;;  %v1515_v37 = vpop.f32.mrb[11].mxu1 }
 0x5f8   :  { %v1518_v38 = vadd.f32 %v1513_v34, %v2381_v62 }
 0x5f9   :  { %1519 = vst [vmem:[#allocation14] sm:$0xff] %v1517_v36 }
 0x5fa   :  { %1520 = vst [vmem:[#allocation14 + $0x8] sm:$0xff] %v1518_v38 }
 0x5fb   :  { %2156 = shalt.err (!%p2153_p4)
}
 0x5fc   :  { %s2157_s3 = scalar_lea.hbm %s2429_s13, 256 }
 0x5fd   :  { %p2158_p5 = scmp.ne.s32.totalorder %s2429_s13, %s2157_s3  ;;  %p2161_p6 = scmp.lt.u32.totalorder %s2157_s3, %s2429_s13 }
 0x5ff   :  { %p2163_p7 = pnand %p2161_p6, %p2158_p5 }
 0x601   :  { %2166 = shalt.err (!%p2163_p7)
}
 0x602   :  { %1530 = dma.vmem_to_hbm [thread:$0]  %s1528_s29, 256, %s2429_s13, [#allocation4]  }
 0x603   :  { %2175 = dma.done.wait [#allocation4], 256  }
 0x604   :  { %2176 = vsyncadd [#allocation4], 4294967040 }
 0x605   :  { %1534 = vsyncpa [#allocation3], 1 }
 0x606   :  { %1535 = vsyncpa [#allocation6], 1 }
 0x607   :  { %1536 = vsyncpa [#allocation9], 1 }
 0x608   :  { %1537 = vsyncpa [#allocation12], 1 }
 0x609   :  { %1538 = vsyncpa [#allocation4], 1 }

</bundles_post_ra>
